<compile_context>
chip_gen: v6e
topology: v6e:2x2x1
jax: 0.10.0
libtpu: 0.0.40
codegen_flags: <defaults>
</compile_context>

<pallas_src>
import jax
import jax.numpy as jnp
from jax.experimental import pallas as pl
from jax.experimental.pallas import tpu as pltpu

TILE_B_MAX = 4096  # max batch rows per grid step (tunable; sweep if desired)


def _cdiv(a, b):
    return (a + b - 1) // b


def _round_up(n, m):
    return ((n + m - 1) // m) * m


def mlp_kernel(x_ref, w1_ref, b1_ref, w2_ref, b2_ref, w3_ref, b3_ref, o_ref):
    # fc1 + relu
    h1 = jnp.dot(x_ref[...], w1_ref[...], preferred_element_type=jnp.float32)
    h1 = jnp.maximum(h1 + b1_ref[...], 0.0)
    # fc2 + relu
    h2 = jnp.dot(h1, w2_ref[...], preferred_element_type=jnp.float32)
    h2 = jnp.maximum(h2 + b2_ref[...], 0.0)
    # fc3 (no activation) — true 2-wide output, no lane padding
    out = jnp.dot(h2, w3_ref[...], preferred_element_type=jnp.float32)
    o_ref[...] = (out + b3_ref[...]).astype(o_ref.dtype)


def _pick_tiling(B, tile_b_max=TILE_B_MAX):
    # Number of grid steps: enough to keep each tile <= tile_b_max, and at least 2
    # steps when the batch is big enough (feeds both TensorCores on v7x).
    num_tiles = max(1, _cdiv(B, tile_b_max))
    if B >= 16:
        num_tiles = max(num_tiles, 2)
    # Tile size: multiple of 8 sublanes, sized so padding added by round-up is minimal.
    tile_b = _round_up(_cdiv(B, num_tiles), 8)
    b_pad = tile_b * num_tiles
    return tile_b, b_pad, num_tiles


def mlp_forward(x, params, tile_b_max=TILE_B_MAX):
    w1, b1, w2, b2, w3, b3 = params
    B, d_in = x.shape
    n_out = w3.shape[1]

    tile_b, b_pad, num_tiles = _pick_tiling(B, tile_b_max)
    if b_pad != B:
        x = jnp.pad(x, ((0, b_pad - B), (0, 0)))

    const = lambda a: pl.BlockSpec(a.shape, lambda i: (0, 0))  # resident in VMEM

    out = pl.pallas_call(
        mlp_kernel,
        out_shape=jax.ShapeDtypeStruct((b_pad, n_out), jnp.float32),
        grid_spec=pl.GridSpec(
            grid=(num_tiles,),
            in_specs=[
                pl.BlockSpec((tile_b, d_in), lambda i: (i, 0)),  # x: tiled over batch
                const(w1), const(b1),
                const(w2), const(b2),
                const(w3), const(b3),
            ],
            out_specs=pl.BlockSpec((tile_b, n_out), lambda i: (i, 0)),
        ),
        compiler_params=pltpu.CompilerParams(
            dimension_semantics=("parallel",),  # megacore split on v7x
        ),
    )(x, w1, b1, w2, b2, w3, b3)

    return out[:B] if b_pad != B else out


def init_params(key):
    # Deterministic init mimicking torch.nn.Linear default (uniform +/- 1/sqrt(fan_in)).
    def linear(key, fan_in, fan_out):
        k_w, k_b = jax.random.split(key)
        bound = 1.0 / jnp.sqrt(fan_in)
        w = jax.random.uniform(k_w, (fan_in, fan_out), jnp.float32, -bound, bound)
        b = jax.random.uniform(k_b, (1, fan_out), jnp.float32, -bound, bound)
        return w, b

    k1, k2, k3 = jax.random.split(key, 3)
    w1, b1 = linear(k1, 8, 16)
    w2, b2 = linear(k2, 16, 16)
    w3, b3 = linear(k3, 16, 2)
    return (w1, b1, w2, b2, w3, b3)


def _reference(x, params):
    w1, b1, w2, b2, w3, b3 = params
    h = jnp.maximum(x @ w1 + b1, 0.0)
    h = jnp.maximum(h @ w2 + b2, 0.0)
    return h @ w3 + b3


if __name__ == "__main__":
    key = jax.random.PRNGKey(0)
    k_params, k_x1, k_x2 = jax.random.split(key, 3)
    params = init_params(k_params)

    # Small case (matches original module usage): B=8.
    x_small = jax.random.normal(k_x1, (8, 8), jnp.float32)
    out_small = mlp_forward(x_small, params)
    jax.block_until_ready(out_small)
    assert out_small.shape == (8, 2)
    assert jnp.allclose(out_small, _reference(x_small, params), atol=1e-5), \
        "mismatch vs reference (small batch)"

    # Larger, non-multiple batch to exercise the batch grid + padding path.
    x_big = jax.random.normal(k_x2, (1000, 8), jnp.float32)
    out_big = mlp_forward(x_big, params)
    jax.block_until_ready(out_big)
    assert out_big.shape == (1000, 2)
    assert jnp.allclose(out_big, _reference(x_big, params), atol=1e-4), \
        "mismatch vs reference (large batch)"

    print("KERNEL_OK")
</pallas_src>

<mosaic_0001>
module attributes {stable_mosaic.version = 11 : i64} {
  func.func @mlp_kernel(%arg0: i32, %arg1: memref<8x8xf32, #tpu.memory_space<vmem>>, %arg2: memref<8x16xf32, #tpu.memory_space<vmem>>, %arg3: memref<1x16xf32, #tpu.memory_space<vmem>>, %arg4: memref<16x16xf32, #tpu.memory_space<vmem>>, %arg5: memref<1x16xf32, #tpu.memory_space<vmem>>, %arg6: memref<16x2xf32, #tpu.memory_space<vmem>>, %arg7: memref<1x2xf32, #tpu.memory_space<vmem>>, %arg8: memref<8x2xf32, #tpu.memory_space<vmem>>) attributes {dimension_semantics = [#tpu.dimension_semantics<parallel>], iteration_bounds = array<i64: 1>, scalar_prefetch = 0 : i64, scratch_operands = 0 : i64, tpu.core_type = #tpu.core_type<tc>, window_params = [{transform_indices = @transform_0, window_bounds = array<i64: 8, 8>}, {pipeline_mode = #tpu.pipeline_mode<synchronous>, transform_indices = @transform_1, window_bounds = array<i64: 8, 16>}, {pipeline_mode = #tpu.pipeline_mode<synchronous>, transform_indices = @transform_2, window_bounds = array<i64: 1, 16>}, {pipeline_mode = #tpu.pipeline_mode<synchronous>, transform_indices = @transform_3, window_bounds = array<i64: 16, 16>}, {pipeline_mode = #tpu.pipeline_mode<synchronous>, transform_indices = @transform_4, window_bounds = array<i64: 1, 16>}, {pipeline_mode = #tpu.pipeline_mode<synchronous>, transform_indices = @transform_5, window_bounds = array<i64: 16, 2>}, {pipeline_mode = #tpu.pipeline_mode<synchronous>, transform_indices = @transform_6, window_bounds = array<i64: 1, 2>}, {transform_indices = @transform_7, window_bounds = array<i64: 8, 2>}]} {
    %c0 = arith.constant 0 : index
    %c0_0 = arith.constant 0 : index
    %0 = vector.load %arg1[%c0, %c0_0] : memref<8x8xf32, #tpu.memory_space<vmem>>, vector<8x8xf32>
    %c0_1 = arith.constant 0 : index
    %c0_2 = arith.constant 0 : index
    %1 = vector.load %arg2[%c0_1, %c0_2] : memref<8x16xf32, #tpu.memory_space<vmem>>, vector<8x16xf32>
    %cst = arith.constant dense<0.000000e+00> : vector<8x16xf32>
    %2 = tpu.matmul %0, %1, %cst {dimension_numbers = #tpu.dot_dimension_numbers<[1], [0], [0], [1], [0, 0, 1, 1], [], []>} : vector<8x8xf32>, vector<8x16xf32>, vector<8x16xf32> -> vector<8x16xf32>
    %c0_3 = arith.constant 0 : index
    %c0_4 = arith.constant 0 : index
    %3 = vector.load %arg3[%c0_3, %c0_4] : memref<1x16xf32, #tpu.memory_space<vmem>>, vector<1x16xf32>
    %4 = vector.broadcast %3 : vector<1x16xf32> to vector<8x16xf32>
    %5 = arith.addf %2, %4 : vector<8x16xf32>
    %cst_5 = arith.constant 0.000000e+00 : f32
    %6 = vector.broadcast %cst_5 : f32 to vector<8x16xf32>
    %7 = arith.maximumf %5, %6 : vector<8x16xf32>
    %c0_6 = arith.constant 0 : index
    %c0_7 = arith.constant 0 : index
    %8 = vector.load %arg4[%c0_6, %c0_7] : memref<16x16xf32, #tpu.memory_space<vmem>>, vector<16x16xf32>
    %cst_8 = arith.constant dense<0.000000e+00> : vector<8x16xf32>
    %9 = tpu.matmul %7, %8, %cst_8 {dimension_numbers = #tpu.dot_dimension_numbers<[1], [0], [0], [1], [0, 0, 1, 1], [], []>} : vector<8x16xf32>, vector<16x16xf32>, vector<8x16xf32> -> vector<8x16xf32>
    %c0_9 = arith.constant 0 : index
    %c0_10 = arith.constant 0 : index
    %10 = vector.load %arg5[%c0_9, %c0_10] : memref<1x16xf32, #tpu.memory_space<vmem>>, vector<1x16xf32>
    %11 = vector.broadcast %10 : vector<1x16xf32> to vector<8x16xf32>
    %12 = arith.addf %9, %11 : vector<8x16xf32>
    %cst_11 = arith.constant 0.000000e+00 : f32
    %13 = vector.broadcast %cst_11 : f32 to vector<8x16xf32>
    %14 = arith.maximumf %12, %13 : vector<8x16xf32>
    %c0_12 = arith.constant 0 : index
    %c0_13 = arith.constant 0 : index
    %15 = vector.load %arg6[%c0_12, %c0_13] : memref<16x2xf32, #tpu.memory_space<vmem>>, vector<16x2xf32>
    %cst_14 = arith.constant dense<0.000000e+00> : vector<8x2xf32>
    %16 = tpu.matmul %14, %15, %cst_14 {dimension_numbers = #tpu.dot_dimension_numbers<[1], [0], [0], [1], [0, 0, 1, 1], [], []>} : vector<8x16xf32>, vector<16x2xf32>, vector<8x2xf32> -> vector<8x2xf32>
    %c0_15 = arith.constant 0 : index
    %c0_16 = arith.constant 0 : index
    %17 = vector.load %arg7[%c0_15, %c0_16] : memref<1x2xf32, #tpu.memory_space<vmem>>, vector<1x2xf32>
    %18 = vector.broadcast %17 : vector<1x2xf32> to vector<8x2xf32>
    %19 = arith.addf %16, %18 : vector<8x2xf32>
    %c0_17 = arith.constant 0 : index
    %c0_18 = arith.constant 0 : index
    %20 = vector.load %arg8[%c0_17, %c0_18] : memref<8x2xf32, #tpu.memory_space<vmem>>, vector<8x2xf32>
    tpu.vector_store %arg8[%c0_17, %c0_18], %19 {strides = array<i32>} : memref<8x2xf32, #tpu.memory_space<vmem>>, vector<8x2xf32>,
    return
  }
  func.func @transform_0(%arg0: i32) -> (i32, i32) {
    %c0_i32 = arith.constant 0 : i32
    %c0_i32_0 = arith.constant 0 : i32
    return %arg0, %c0_i32 : i32, i32
  }
  func.func @transform_1(%arg0: i32) -> (i32, i32) {
    %c0_i32 = arith.constant 0 : i32
    %c0_i32_0 = arith.constant 0 : i32
    %c0_i32_1 = arith.constant 0 : i32
    return %c0_i32, %c0_i32_0 : i32, i32
  }
  func.func @transform_2(%arg0: i32) -> (i32, i32) {
    %c0_i32 = arith.constant 0 : i32
    %c0_i32_0 = arith.constant 0 : i32
    %c0_i32_1 = arith.constant 0 : i32
    return %c0_i32, %c0_i32_0 : i32, i32
  }
  func.func @transform_3(%arg0: i32) -> (i32, i32) {
    %c0_i32 = arith.constant 0 : i32
    %c0_i32_0 = arith.constant 0 : i32
    %c0_i32_1 = arith.constant 0 : i32
    return %c0_i32, %c0_i32_0 : i32, i32
  }
  func.func @transform_4(%arg0: i32) -> (i32, i32) {
    %c0_i32 = arith.constant 0 : i32
    %c0_i32_0 = arith.constant 0 : i32
    %c0_i32_1 = arith.constant 0 : i32
    return %c0_i32, %c0_i32_0 : i32, i32
  }
  func.func @transform_5(%arg0: i32) -> (i32, i32) {
    %c0_i32 = arith.constant 0 : i32
    %c0_i32_0 = arith.constant 0 : i32
    %c0_i32_1 = arith.constant 0 : i32
    return %c0_i32, %c0_i32_0 : i32, i32
  }
  func.func @transform_6(%arg0: i32) -> (i32, i32) {
    %c0_i32 = arith.constant 0 : i32
    %c0_i32_0 = arith.constant 0 : i32
    %c0_i32_1 = arith.constant 0 : i32
    return %c0_i32, %c0_i32_0 : i32, i32
  }
  func.func @transform_7(%arg0: i32) -> (i32, i32) {
    %c0_i32 = arith.constant 0 : i32
    %c0_i32_0 = arith.constant 0 : i32
    return %arg0, %c0_i32 : i32, i32
  }
}

</mosaic_0001>

<bundles_post_ra>
// kernel: tpu_custom_call.1
= control target key start
LH: loop header
LB: loop body
LE: loop exit
PB: predicated region body
PF: predicated region fallthrough
CT: control target
= control target key end

     0   :  { %12 = vsyncpa [#allocation3], 0  ;;  %s463_s0 = inlined_call_operand.hbm [shape: f32[8,8], index: 0, kind: input, shape index: {}]   ;;  %s464_s1 = inlined_call_operand.hbm [shape: f32[8,16], index: 1, kind: input, shape index: {}]   ;;  %s465_s2 = inlined_call_operand.vmem [shape: f32[1,16], index: 2, kind: input, shape index: {}]   ;;  %s466_s3 = inlined_call_operand.vmem [shape: f32[16,16], index: 3, kind: input, shape index: {}]   ;;  %s467_s4 = inlined_call_operand.vmem [shape: f32[1,16], index: 4, kind: input, shape index: {}]   ;;  %s468_s5 = inlined_call_operand.vmem [shape: f32[16,2], index: 5, kind: input, shape index: {}]   ;;  %s469_s6 = inlined_call_operand.vmem [shape: f32[1,2], index: 6, kind: input, shape index: {}]   ;;  %s470_s7 = inlined_call_operand.vmem [shape: f32[8,2], index: 7, kind: output, shape index: {}]  }
   0x1   :  { %13 = vsyncpa [#allocation5], 0  ;;  %s389_s24 = smov [#allocation2]   ;;  %s390_s26 = smov [#allocation4]  }
   0x2   :  { %s20_s25 = sshll.u32 %s389_s24, 4  ;;  %s30_s27 = sshll.u32 %s390_s26, 4  ;;  %s21_s25 = int_to_ptr.vmem [resolvable:$true] %s20_s25  ;;  %s31_s27 = int_to_ptr.vmem [resolvable:$true] %s30_s27 }
   0x3   :  { %s353_s28 = scalar_lea.vmem %s21_s25, 128  ;;  %p358_p1 = scmp.lt.s32.totalorder %s21_s25, %s21_s25 }
   0x4   :  { %p354_p0 = scmp.ne.s32.totalorder %s21_s25, %s353_s28  ;;  %p359_p2 = scmp.lt.s32.totalorder %s353_s28, %s353_s28 }
   0x6   :  { %p360_p3 = por %p359_p2, %p358_p1 }
   0x8   :  { %p361_p4 = pnand %p360_p3, %p354_p0 }
   0xa   :  { %364 = shalt.err (!%p361_p4)
}
   0xb   :  { %23 = dma.hbm_to_vmem [thread:$0]  %s463_s0, 128, %s21_s25, [#allocation3]  }
   0xc   :  { %s373_s8 = scalar_lea.vmem %s31_s27, 128  ;;  %p378_p6 = scmp.lt.s32.totalorder %s31_s27, %s31_s27 }
   0xd   :  { %p374_p5 = scmp.ne.s32.totalorder %s31_s27, %s373_s8  ;;  %p379_p7 = scmp.lt.s32.totalorder %s373_s8, %s373_s8 }
   0xf   :  { %p380_p8 = por %p379_p7, %p378_p6 }
  0x11   :  { %p381_p9 = pnand %p380_p8, %p374_p5 }
  0x13   :  { %384 = shalt.err (!%p381_p9)
}
  0x14   :  { %33 = dma.hbm_to_vmem [thread:$0]  %s464_s1, 128, %s31_s27, [#allocation5]  }
  0x15   :  { %385 = dma.done.wait [#allocation3], 128  }
  0x16   :  { %386 = vsyncadd [#allocation3], 4294967168 }
  0x17   :  { %387 = dma.done.wait [#allocation5], 128  }
  0x18   :  { %388 = vsyncadd [#allocation5], 4294967168  ;;  %v391_v0 = vmov 0.0   ;;  %vm392_vm0 = vmmov 0   ;;  %vm59_vm1 = vcmask 64512   ;;  %v51_v1 = vld [vmem:[#allocation4] sm:$0xff] }
  0x19   :  { %322 = vmatprep.subr.mxu0 %v391_v0  ;;  %324 = vmatprep.mubr.msk.f32.mxu0 %vm392_vm0, %v391_v0  ;;  %v50_v2 = vld [vmem:[#allocation2] sm:$0xff]  ;;  %v135_v3 = vld [vmem:[%s466_s3 + $0x8] sm:$0xff]  ;;  %vm143_vm2 = vcmask 130048   ;;  %vm300_vm3 = vcmask 15360  }
  0x1a   :  { %327 = vmatprep.subr.mxu1 %v391_v0  ;;  %331 = vmatprep.mubr.msk.f32.mxu1 %vm392_vm0, %v391_v0  ;;  %v134_v4 = vld [vmem:[%s466_s3] sm:$0xff]  ;;  %v219_v10 = vld [vmem:[%s468_s5 + $0x8] sm:$0xff] }
  0x1b   :  { %323 = vmatpush3.msra.mxu0 %v51_v1  ;;  %328 = vmatpush3.msra.mxu1 %v135_v3  ;;  %v308_v5 = vld [vmem:[%s465_s2] ss:$0 sm:$0xff] }
  0x1c   :  { %325 = vmatmul.mubr.msk.f32.vlgmr.msra.gmra.mxu0 %vm59_vm1, %v50_v2  ;;  %334 = vmatprep.subr.mxu0 %v391_v0  ;;  %v218_v11 = vld [vmem:[%s468_s5] sm:$0xff] }
  0x1d   :  { %338 = vmatprep.mubr.msk.f32.mxu0 %vm392_vm0, %v391_v0  ;;  %329 = vmatprep.subr.mxu1 %v391_v0  ;;  %v310_v12 = vld [vmem:[%s467_s4] ss:$0 sm:$0xff] }
  0x1e   :  { %330 = vmatpush3.msra.mxu1 %v134_v4  ;;  %335 = vmatpush3.msra.mxu0 %v219_v10  ;;  %v312_v17 = vld [vmem:[%s469_s6] ss:$0 sm:$0xff] }
  0x1f   :  { %336 = vmatprep.subr.mxu0 %v391_v0 }
  0x20   :  { %337 = vmatpush3.msra.mxu0 %v218_v11 }
  0xdc   :  { %v129_v6 = vpop.f32.mrf.mxu0 }
  0xdd   :  { %v130_v7 = vadd.f32 %v308_v5, %v129_v6 }
  0xde   :  { %v326_v8 = vpop.f32.mrf.mxu0 }
  0xdf   :  { %v133_v9 = vmax.f32 %v130_v7, 0.0 }
  0xe1   :  { %332 = vmatmul.mubr.msk.f32.vlgmr.msra.gmra.mxu1 %vm143_vm2, %v133_v9 }
 0x1a1   :  { %v213_v13 = vpop.f32.mrf.mxu1 }
 0x1a2   :  { %v214_v14 = vadd.f32 %v310_v12, %v213_v13 }
 0x1a3   :  { %v333_v15 = vpop.f32.mrf.mxu1 }
 0x1a4   :  { %v217_v16 = vmax.f32 %v214_v14, 0.0 }
 0x1a6   :  { %339 = vmatmul.mubr.msk.f32.vlgmr.msra.gmra.mxu0 %vm143_vm2, %v217_v16 }
 0x266   :  { %v296_v18 = vpop.f32.mrf.mxu0 }
 0x267   :  { %v297_v19 = vadd.f32 %v312_v17, %v296_v18 }
 0x268   :  { %v340_v20 = vpop.f32.mrf.mxu0 }
 0x269   :  { %301 = vst.msk [vmem:[%s470_s7] sm:$0xff] %vm300_vm3, %v297_v19 }
 0x26a   :  { %306 = vsyncpa [#allocation3], 1 }
 0x26b   :  { %307 = vsyncpa [#allocation5], 1 }

</bundles_post_ra>
